<compile_context>
chip_gen: v7x
topology: tpu7x:2x2x1
jax: 0.10.0
libtpu: 0.0.40
codegen_flags: <defaults>
</compile_context>

<pallas_src>
from functools import partial

import jax
import jax.numpy as jnp
from jax.experimental import pallas as pl
from jax.experimental.pallas import tpu as pltpu


# ----------------------------- tiling helpers ------------------------------

_TARGET_BLOCK_BYTES = 2 * 1024 * 1024   # ~2 MiB per block buffer
_ROW_ALIGN = 32                          # safe sublane packing for f32/bf16/i8


def _choose_lanes(total):
    """Largest lane-dense width (multiple of 128) that divides `total`.

    Returns None if `total` is not a multiple of 128 (rare; handled by a
    one-time pad fallback)."""
    for lanes in (8192, 4096, 2048, 1024, 512, 256, 128):
        if total % lanes == 0:
            return lanes
    return None


# ------------------------------ Pallas kernel -------------------------------

def _make_neg_scale_kernel(neg_alpha):
    """Backward of GRL: o = (-alpha) * g, with -alpha baked in as a constant."""
    def kernel(g_ref, o_ref):
        o_ref[...] = g_ref[...] * neg_alpha
    return kernel


def _neg_scale_pallas(g, alpha):
    """Compute -alpha * g with a tiled, lane-dense Pallas TPU kernel."""
    orig_shape = g.shape
    total = int(g.size)
    if total == 0:
        return g

    neg_alpha = -float(alpha)

    # Flatten (free for contiguous arrays) and pick a lane-dense slab shape.
    flat = g.reshape(-1)
    lanes = _choose_lanes(total)
    padded_total = total
    if lanes is None:
        # TODO(synk): element count not a multiple of 128 -> pad once; this is
        # the only case that costs an extra HBM pass (pad + tail slice).
        lanes = 1024
        padded_total = pl.cdiv(total, lanes) * lanes
        flat = jnp.pad(flat, (0, padded_total - total))
    rows = padded_total // lanes
    g2 = flat.reshape(rows, lanes)

    # Row tile: ~2 MiB per block buffer, multiple of 32 rows; if the slab is
    # small, use the full row extent as a single block (always layout-legal).
    itemsize = jnp.dtype(g2.dtype).itemsize
    target_rows = max(1, _TARGET_BLOCK_BYTES // (lanes * itemsize))
    if rows <= target_rows:
        tm = rows
    else:
        tm = max(_ROW_ALIGN, (target_rows // _ROW_ALIGN) * _ROW_ALIGN)
    grid = (pl.cdiv(rows, tm),)

    out = pl.pallas_call(
        _make_neg_scale_kernel(neg_alpha),
        out_shape=jax.ShapeDtypeStruct((rows, lanes), g2.dtype),
        grid_spec=pltpu.PrefetchScalarGridSpec(
            num_scalar_prefetch=0,
            grid=grid,
            in_specs=[pl.BlockSpec((tm, lanes), lambda i: (i, 0))],
            out_specs=pl.BlockSpec((tm, lanes), lambda i: (i, 0)),
        ),
        compiler_params=pltpu.CompilerParams(
            dimension_semantics=("parallel",),
        ),
    )(g2)

    out_flat = out.reshape(-1)
    if padded_total != total:
        out_flat = out_flat[:total]
    return out_flat.reshape(orig_shape)


# ------------------------- GRL with custom gradient -------------------------

@partial(jax.custom_vjp, nondiff_argnums=(1,))
def gradient_reversal(x, alpha=1.0):
    """Forward: identity (x.view_as(x) in PyTorch -> just return x).
    Backward: -alpha * grad (Pallas kernel)."""
    return x


def _grl_fwd(x, alpha):
    # No copy kernel: identity forward is free (no HBM round-trip).
    return x, None


def _grl_bwd(alpha, _residuals, g):
    return (_neg_scale_pallas(g, alpha),)


gradient_reversal.defvjp(_grl_fwd, _grl_bwd)


class GradientReversalLayer:
    """JAX/Pallas equivalent of the PyTorch GradientReversalLayer module."""

    def __init__(self, alpha=1.0):
        self.alpha = float(alpha)  # no learnable parameters

    def __call__(self, x):
        return gradient_reversal(x, self.alpha)


# ----------------------------------- main -----------------------------------

if __name__ == "__main__":
    key = jax.random.PRNGKey(0)
    # NCHW, small shapes: batch=2, channels=4, spatial=16
    x = jax.random.normal(key, (2, 4, 16, 16), dtype=jnp.float32)

    # Default alpha = 1.0
    layer = GradientReversalLayer(alpha=1.0)

    # Forward: identity (no kernel, zero extra HBM traffic).
    y = jax.block_until_ready(layer(x))
    assert y.shape == x.shape and y.dtype == x.dtype
    assert bool(jnp.allclose(y, x)), "forward of GRL must be identity"

    # Backward: exercises the Pallas neg-scale kernel (divisible / no-pad path).
    g = jax.block_until_ready(jax.grad(lambda t: jnp.sum(layer(t)))(x))
    assert bool(jnp.allclose(g, -1.0 * jnp.ones_like(x))), "backward must be -alpha*g"

    # Non-trivial alpha to check the baked-in scaling.
    layer2 = GradientReversalLayer(alpha=0.5)
    g2 = jax.block_until_ready(jax.grad(lambda t: jnp.sum(layer2(t)))(x))
    assert bool(jnp.allclose(g2, -0.5 * jnp.ones_like(x))), "backward must scale by alpha"

    # Ragged size (105 elements) to exercise the pad fallback path.
    x_odd = jax.random.normal(jax.random.PRNGKey(1), (3, 5, 7), dtype=jnp.float32)
    g_odd = jax.block_until_ready(jax.grad(lambda t: jnp.sum(layer2(t) * 2.0))(x_odd))
    assert bool(jnp.allclose(g_odd, -1.0 * jnp.ones_like(x_odd))), "ragged path wrong"

    # bf16 cotangent path (layout-safe row tiling / packing).
    x_bf16 = jax.random.normal(jax.random.PRNGKey(2), (2, 4, 16, 16)).astype(jnp.bfloat16)
    g_bf16 = jax.block_until_ready(jax.grad(lambda t: jnp.sum(layer(t).astype(jnp.float32)))(x_bf16))
    assert g_bf16.dtype == jnp.bfloat16
    assert bool(jnp.allclose(g_bf16.astype(jnp.float32), -1.0)), "bf16 path wrong"

    print("KERNEL_OK")
</pallas_src>

<mosaic_0001>
module attributes {stable_mosaic.version = 11 : i64} {
  func.func @kernel(%arg0: i32, %arg1: memref<1x2048xf32, #tpu.memory_space<vmem>>, %arg2: memref<1x2048xf32, #tpu.memory_space<vmem>>) attributes {dimension_semantics = [#tpu.dimension_semantics<parallel>], iteration_bounds = array<i64: 1>, scalar_prefetch = 0 : i64, scratch_operands = 0 : i64, tpu.core_type = #tpu.core_type<tc>, window_params = [{transform_indices = @transform_0, window_bounds = array<i64: 1, 2048>}, {transform_indices = @transform_1, window_bounds = array<i64: 1, 2048>}]} {
    %c0 = arith.constant 0 : index
    %c0_0 = arith.constant 0 : index
    %0 = vector.load %arg1[%c0, %c0_0] : memref<1x2048xf32, #tpu.memory_space<vmem>>, vector<1x2048xf32>
    %cst = arith.constant -1.000000e+00 : f32
    %1 = vector.broadcast %cst : f32 to vector<1x2048xf32>
    %2 = arith.mulf %0, %1 : vector<1x2048xf32>
    %c0_1 = arith.constant 0 : index
    %c0_2 = arith.constant 0 : index
    %3 = vector.load %arg2[%c0_1, %c0_2] : memref<1x2048xf32, #tpu.memory_space<vmem>>, vector<1x2048xf32>
    tpu.vector_store %arg2[%c0_1, %c0_2], %2 {strides = array<i32>} : memref<1x2048xf32, #tpu.memory_space<vmem>>, vector<1x2048xf32>,
    return
  }
  func.func @transform_0(%arg0: i32) -> (i32, i32) {
    %c0_i32 = arith.constant 0 : i32
    %c0_i32_0 = arith.constant 0 : i32
    return %arg0, %c0_i32 : i32, i32
  }
  func.func @transform_1(%arg0: i32) -> (i32, i32) {
    %c0_i32 = arith.constant 0 : i32
    %c0_i32_0 = arith.constant 0 : i32
    return %arg0, %c0_i32 : i32, i32
  }
}

</mosaic_0001>

<bundles_post_ra>
// kernel: tpu_custom_call.1
= control target key start
LH: loop header
LB: loop body
LE: loop exit
PB: predicated region body
PF: predicated region fallthrough
CT: control target
= control target key end

     0   :  { %6 = vsyncpa [#allocation3], 0  ;;  %s128_s0 = inlined_call_operand.hbm [shape: f32[1,2048], index: 0, kind: input, shape index: {}]   ;;  %s129_s1 = inlined_call_operand.hbm [shape: f32[1,2048], index: 1, kind: output, shape index: {}]  }
   0x1   :  { %7 = vsyncpa [#allocation4], 0  ;;  %s92_s6 = smov [#allocation2]   ;;  %s44_s10 = scalar_lea.hbm %s128_s0, 256 }
   0x2   :  { %s14_s7 = sshll.u32 %s92_s6, 4  ;;  %p45_p0 = scmp.ne.s32.totalorder %s128_s0, %s44_s10  ;;  %s15_s7 = int_to_ptr.vmem [resolvable:$true] %s14_s7 }
   0x3   :  { %p48_p1 = scmp.lt.u32.totalorder %s44_s10, %s128_s0 }
   0x5   :  { %p50_p2 = pnand %p48_p1, %p45_p0 }
   0x7   :  { %53 = shalt.err (!%p50_p2)
}
   0x8   :  { %s54_s15 = scalar_lea.vmem %s15_s7, 256  ;;  %p59_p4 = scmp.lt.s32.totalorder %s15_s7, %s15_s7 }
   0x9   :  { %p55_p3 = scmp.ne.s32.totalorder %s15_s7, %s54_s15  ;;  %p60_p5 = scmp.lt.s32.totalorder %s54_s15, %s54_s15 }
   0xb   :  { %p61_p6 = por %p60_p5, %p59_p4 }
   0xd   :  { %p62_p7 = pnand %p61_p6, %p55_p3 }
   0xf   :  { %65 = shalt.err (!%p62_p7)
}
  0x10   :  { %17 = dma.hbm_to_vmem [thread:$0]  %s128_s0, 256, %s15_s7, [#allocation3]  }
  0x11   :  { %88 = dma.done.wait [#allocation3], 256  }
  0x12   :  { %89 = vsyncadd [#allocation3], 4294967040  ;;  %s93_s18 = smov [#allocation5]   ;;  %v21_v0 = vld [vmem:[#allocation2] sm:$0xff]  ;;  %v22_v1 = vld [vmem:[#allocation2 + $0x8] sm:$0xff] }
  0x13   :  { %s33_s19 = sshll.u32 %s93_s18, 4  ;;  %v23_v2 = vmul.f32 -1.0, %v21_v0  ;;  %v24_v3 = vmul.f32 -1.0, %v22_v1  ;;  %s34_s19 = int_to_ptr.vmem [resolvable:$true] %s33_s19 }
  0x14   :  { %s66_s20 = scalar_lea.vmem %s34_s19, 256  ;;  %p71_p9 = scmp.lt.s32.totalorder %s34_s19, %s34_s19 }
  0x15   :  { %25 = vst [vmem:[#allocation5] sm:$0xff] %v23_v2  ;;  %26 = vst [vmem:[#allocation5 + $0x8] sm:$0xff] %v24_v3  ;;  %p67_p8 = scmp.ne.s32.totalorder %s34_s19, %s66_s20  ;;  %p72_p10 = scmp.lt.s32.totalorder %s66_s20, %s66_s20 }
  0x17   :  { %p73_p11 = por %p72_p10, %p71_p9 }
  0x19   :  { %p74_p12 = pnand %p73_p11, %p67_p8 }
  0x1b   :  { %77 = shalt.err (!%p74_p12)
}
  0x1c   :  { %s78_s22 = scalar_lea.hbm %s129_s1, 256 }
  0x1d   :  { %p79_p13 = scmp.ne.s32.totalorder %s129_s1, %s78_s22  ;;  %p82_p0 = scmp.lt.u32.totalorder %s78_s22, %s129_s1 }
  0x1f   :  { %p84_p1 = pnand %p82_p0, %p79_p13 }
  0x21   :  { %87 = shalt.err (!%p84_p1)
}
  0x22   :  { %36 = dma.vmem_to_hbm [thread:$0]  %s34_s19, 256, %s129_s1, [#allocation4]  }
  0x23   :  { %90 = dma.done.wait [#allocation4], 256  }
  0x24   :  { %91 = vsyncadd [#allocation4], 4294967040 }
  0x25   :  { %40 = vsyncpa [#allocation3], 1 }
  0x26   :  { %41 = vsyncpa [#allocation4], 1 }

</bundles_post_ra>
